<compile_context>
chip_gen: v7x
topology: tpu7x:2x2x1
jax: 0.10.0
libtpu: 0.0.40
codegen_flags: <defaults>
</compile_context>

<pallas_src>
import functools

import jax
import jax.numpy as jnp
from jax import lax
from jax.experimental import pallas as pl
from jax.experimental.pallas import tpu as pltpu


_EPS = 1e-12                        # F.normalize eps
_VMEM_LIMIT = 48 * 1024 * 1024      # explicit scoped-VMEM limit (safe on v5e/v6e/v7x)
_VMEM_BUDGET = 36 * 1024 * 1024     # working-set target used by the tile picker


# ---------------------------------------------------------------------------
# Prologue: normalize rows, fold 1/T into the student, cast to bf16, and emit
# the diagonal (positive-pair) logit per row in f32.
# ---------------------------------------------------------------------------
def _normalize_kernel(s_ref, t_ref, s_out, t_out, d_out, *, inv_temp):
    s = s_ref[...].astype(jnp.float32)
    t = t_ref[...].astype(jnp.float32)
    s_inv = lax.rsqrt(jnp.maximum(jnp.sum(s * s, axis=1, keepdims=True),
                                  _EPS * _EPS))
    t_inv = lax.rsqrt(jnp.maximum(jnp.sum(t * t, axis=1, keepdims=True),
                                  _EPS * _EPS))
    s_scaled = s * (s_inv * inv_temp)          # normalized student / T (f32)
    t_norm = t * t_inv                         # normalized teacher     (f32)
    # diag logit in f32 (used for CE's label term and the MSE cosine)
    d_out[...] = jnp.sum(s_scaled * t_norm, axis=1, keepdims=True)
    s_out[...] = s_scaled.astype(s_out.dtype)  # bf16 MXU operand
    t_out[...] = t_norm.astype(t_out.dtype)    # bf16 MXU operand


# ---------------------------------------------------------------------------
# Main kernel: bf16 similarity matmul + fixed-shift logsumexp over teacher
# tiles, epilogue combines CE and MSE per row.
# ---------------------------------------------------------------------------
def _ce_loss_kernel(s_ref, t_ref, d_ref, out_ref, l_scr,
                    *, temperature, alpha, feature_dim):
    j = pl.program_id(1)
    nj = pl.num_programs(1)
    # Rows are unit-norm and 1/T is already folded into s_ref, so every logit
    # is bounded by 1/T; use it as a compile-time logsumexp shift (no running
    # max, no correction pass).
    shift = 1.0 / temperature

    @pl.when(j == 0)
    def _init():
        l_scr[...] = jnp.zeros_like(l_scr)

    # (tm, tn) logits tile: bf16 x bf16 NT contraction, f32 accumulation.
    logits = lax.dot_general(s_ref[...], t_ref[...],
                             dimension_numbers=(((1,), (1,)), ((), ())),
                             preferred_element_type=jnp.float32)
    l_scr[...] += jnp.sum(jnp.exp(logits - shift), axis=1, keepdims=True)

    @pl.when(j == nj - 1)
    def _fin():
        lse = shift + jnp.log(l_scr[...])      # (tm, 1)
        diag = d_ref[...]                      # f32 diag logits
        ce_row = lse - diag                    # per-row cross entropy
        cos = diag * temperature               # cosine(s_i, t_i)
        # unit-norm rows => mean_d (s - t)^2 = (2/D) * (1 - cos)
        mse_row = (2.0 / feature_dim) * (1.0 - cos)
        out_ref[...] = alpha * ce_row + (1.0 - alpha) * mse_row


# ---------------------------------------------------------------------------
# Tile pickers (VMEM-budget aware; operands are bf16 after the prologue).
# ---------------------------------------------------------------------------
def _pick_row_tile(n):
    for t in (512, 256, 128):
        if n % t == 0:
            return t
    return n   # small / ragged batch: single full-extent tile


def _pick_main_tiles(n, d):
    def fits(tm, tn):
        approx = (2 * tm * d * 2         # student tile, double-buffered (bf16)
                  + 2 * tn * d * 2       # teacher tile, double-buffered (bf16)
                  + 4 * tm * 4           # diag + out tiles, double-buffered
                  + tm * 4               # running sum-exp scratch
                  + 3 * tm * tn * 4)     # logits + exp temporaries (f32)
        return approx <= _VMEM_BUDGET

    # Prefer large tm (fewer teacher HBM passes / fewer grid steps), then the
    # widest tn that fits (>=256 keeps the v6e/v7x 256-wide MXU output full).
    for tm in (1024, 512, 256, 128):
        if n % tm:
            continue
        for tn in (512, 256, 128):
            if n % tn:
                continue
            if fits(tm, tn):
                return tm, tn
    # TODO(synk): ragged N falls back to one full-extent tile; pad/mask for
    # very large batches not divisible by 128.
    return n, n


# ---------------------------------------------------------------------------
# Wrapper
# ---------------------------------------------------------------------------
def self_supervised_distillation_loss(student_features, teacher_features,
                                      temperature=0.5, alpha=0.5):
    assert student_features.shape == teacher_features.shape
    assert student_features.ndim == 2
    n, d = student_features.shape
    inv_temp = 1.0 / float(temperature)

    # ---- prologue: normalize + bf16 cast + diag logits (O(N*D)) -----------
    tp = _pick_row_tile(n)
    s_scaled, t_norm, diag = pl.pallas_call(
        functools.partial(_normalize_kernel, inv_temp=inv_temp),
        out_shape=(jax.ShapeDtypeStruct((n, d), jnp.bfloat16),
                   jax.ShapeDtypeStruct((n, d), jnp.bfloat16),
                   jax.ShapeDtypeStruct((n, 1), jnp.float32)),
        grid_spec=pltpu.PrefetchScalarGridSpec(
            num_scalar_prefetch=0,
            grid=(n // tp,),
            in_specs=[pl.BlockSpec((tp, d), lambda i: (i, 0)),
                      pl.BlockSpec((tp, d), lambda i: (i, 0))],
            out_specs=[pl.BlockSpec((tp, d), lambda i: (i, 0)),
                       pl.BlockSpec((tp, d), lambda i: (i, 0)),
                       pl.BlockSpec((tp, 1), lambda i: (i, 0))]),
        compiler_params=pltpu.CompilerParams(
            dimension_semantics=("parallel",),
            vmem_limit_bytes=_VMEM_LIMIT),
    )(student_features, teacher_features)

    # ---- main pass: tiled bf16 similarity + fixed-shift logsumexp ---------
    tm, tn = _pick_main_tiles(n, d)
    grid = (n // tm, n // tn)
    kernel = functools.partial(_ce_loss_kernel,
                               temperature=float(temperature),
                               alpha=float(alpha),
                               feature_dim=float(d))

    per_row = pl.pallas_call(
        kernel,
        out_shape=jax.ShapeDtypeStruct((n, 1), jnp.float32),
        grid_spec=pltpu.PrefetchScalarGridSpec(
            num_scalar_prefetch=0,
            grid=grid,
            in_specs=[
                pl.BlockSpec((tm, d), lambda i, j: (i, 0)),   # student (bf16, /T)
                pl.BlockSpec((tn, d), lambda i, j: (j, 0)),   # teacher (bf16)
                pl.BlockSpec((tm, 1), lambda i, j: (i, 0)),   # diag logits (f32)
            ],
            out_specs=pl.BlockSpec((tm, 1), lambda i, j: (i, 0)),
            scratch_shapes=[pltpu.VMEM((tm, 1), jnp.float32)]),  # running sum-exp
        compiler_params=pltpu.CompilerParams(
            dimension_semantics=("parallel", "arbitrary"),
            vmem_limit_bytes=_VMEM_LIMIT),
        cost_estimate=pl.CostEstimate(
            flops=2 * n * n * d,
            transcendentals=n * n,
            bytes_accessed=n * d * 2 + (n // tm) * n * d * 2 + 2 * n * 4),
    )(s_scaled, t_norm, diag)

    # Tiny epilogue: mean of N per-row contributions (kept outside the kernel
    # so the parallel row-tile axis stays megacore-safe).
    return jnp.mean(per_row)


if __name__ == "__main__":
    key = jax.random.PRNGKey(0)
    k1, k2 = jax.random.split(key)
    N, D = 384, 256                      # auto-tiles to a 3x3 grid of 128-row tiles
    student = jax.random.normal(k1, (N, D), dtype=jnp.float32)
    teacher = jax.random.normal(k2, (N, D), dtype=jnp.float32)

    loss = self_supervised_distillation_loss(student, teacher,
                                             temperature=0.5, alpha=0.5)
    loss = jax.block_until_ready(loss)

    # Pure-JAX reference mirroring the PyTorch module exactly (f32, HIGHEST).
    def ref(s, t, temperature=0.5, alpha=0.5):
        eps = 1e-12
        sn = s / jnp.maximum(jnp.linalg.norm(s, axis=1, keepdims=True), eps)
        tn_ = t / jnp.maximum(jnp.linalg.norm(t, axis=1, keepdims=True), eps)
        logits = jnp.dot(sn, tn_.T,
                         precision=jax.lax.Precision.HIGHEST) / temperature
        lse = jax.scipy.special.logsumexp(logits, axis=1)
        ce = jnp.mean(lse - jnp.diag(logits))
        mse = jnp.mean((sn - tn_) ** 2)
        return alpha * ce + (1 - alpha) * mse

    expected = ref(student, teacher)
    # Tolerance relaxed vs the f32 version: the similarity matmul now runs with
    # bf16 operands (f32 accumulation) on the MXU.
    assert jnp.allclose(loss, expected, rtol=5e-3, atol=5e-3), (loss, expected)
    print("KERNEL_OK")
</pallas_src>

<mosaic_0001>
module attributes {stable_mosaic.version = 11 : i64} {
  func.func @_normalize_kernel(%arg0: i32, %arg1: memref<128x256xf32, #tpu.memory_space<vmem>>, %arg2: memref<128x256xf32, #tpu.memory_space<vmem>>, %arg3: memref<128x256xbf16, #tpu.memory_space<vmem>>, %arg4: memref<128x256xbf16, #tpu.memory_space<vmem>>, %arg5: memref<128x1xf32, #tpu.memory_space<vmem>>) attributes {dimension_semantics = [#tpu.dimension_semantics<parallel>], iteration_bounds = array<i64: 3>, scalar_prefetch = 0 : i64, scratch_operands = 0 : i64, tpu.core_type = #tpu.core_type<tc>, window_params = [{transform_indices = @transform_0, window_bounds = array<i64: 128, 256>}, {transform_indices = @transform_1, window_bounds = array<i64: 128, 256>}, {transform_indices = @transform_2, window_bounds = array<i64: 128, 256>}, {transform_indices = @transform_3, window_bounds = array<i64: 128, 256>}, {transform_indices = @transform_4, window_bounds = array<i64: 128, 1>}]} {
    %c0 = arith.constant 0 : index
    %c0_0 = arith.constant 0 : index
    %0 = vector.load %arg1[%c0, %c0_0] : memref<128x256xf32, #tpu.memory_space<vmem>>, vector<128x256xf32>
    %c0_1 = arith.constant 0 : index
    %c0_2 = arith.constant 0 : index
    %1 = vector.load %arg2[%c0_1, %c0_2] : memref<128x256xf32, #tpu.memory_space<vmem>>, vector<128x256xf32>
    %2 = arith.mulf %0, %0 : vector<128x256xf32>
    %cst = arith.constant dense<0.000000e+00> : vector<128xf32>
    %3 = vector.multi_reduction <add>, %2, %cst [1] : vector<128x256xf32> to vector<128xf32>
    %4 = vector.shape_cast %3 : vector<128xf32> to vector<128x1xf32>
    %cst_3 = arith.constant 1.000000e-24 : f32
    %5 = vector.broadcast %cst_3 : f32 to vector<128x1xf32>
    %6 = arith.maximumf %4, %5 : vector<128x1xf32>
    %7 = math.rsqrt %6 : vector<128x1xf32>
    %8 = arith.mulf %1, %1 : vector<128x256xf32>
    %cst_4 = arith.constant dense<0.000000e+00> : vector<128xf32>
    %9 = vector.multi_reduction <add>, %8, %cst_4 [1] : vector<128x256xf32> to vector<128xf32>
    %10 = vector.shape_cast %9 : vector<128xf32> to vector<128x1xf32>
    %cst_5 = arith.constant 1.000000e-24 : f32
    %11 = vector.broadcast %cst_5 : f32 to vector<128x1xf32>
    %12 = arith.maximumf %10, %11 : vector<128x1xf32>
    %13 = math.rsqrt %12 : vector<128x1xf32>
    %cst_6 = arith.constant 2.000000e+00 : f32
    %14 = vector.broadcast %cst_6 : f32 to vector<128x1xf32>
    %15 = arith.mulf %7, %14 : vector<128x1xf32>
    %16 = vector.broadcast %15 : vector<128x1xf32> to vector<128x256xf32>
    %17 = arith.mulf %0, %16 : vector<128x256xf32>
    %18 = vector.broadcast %13 : vector<128x1xf32> to vector<128x256xf32>
    %19 = arith.mulf %1, %18 : vector<128x256xf32>
    %20 = arith.mulf %17, %19 : vector<128x256xf32>
    %cst_7 = arith.constant dense<0.000000e+00> : vector<128xf32>
    %21 = vector.multi_reduction <add>, %20, %cst_7 [1] : vector<128x256xf32> to vector<128xf32>
    %22 = vector.shape_cast %21 : vector<128xf32> to vector<128x1xf32>
    %c0_8 = arith.constant 0 : index
    %c0_9 = arith.constant 0 : index
    %23 = vector.load %arg5[%c0_8, %c0_9] : memref<128x1xf32, #tpu.memory_space<vmem>>, vector<128x1xf32>
    tpu.vector_store %arg5[%c0_8, %c0_9], %22 {strides = array<i32>} : memref<128x1xf32, #tpu.memory_space<vmem>>, vector<128x1xf32>,
    %24 = arith.truncf %17 : vector<128x256xf32> to vector<128x256xbf16>
    %c0_10 = arith.constant 0 : index
    %c0_11 = arith.constant 0 : index
    %25 = vector.load %arg3[%c0_10, %c0_11] : memref<128x256xbf16, #tpu.memory_space<vmem>>, vector<128x256xbf16>
    tpu.vector_store %arg3[%c0_10, %c0_11], %24 {strides = array<i32>} : memref<128x256xbf16, #tpu.memory_space<vmem>>, vector<128x256xbf16>,
    %26 = arith.truncf %19 : vector<128x256xf32> to vector<128x256xbf16>
    %c0_12 = arith.constant 0 : index
    %c0_13 = arith.constant 0 : index
    %27 = vector.load %arg4[%c0_12, %c0_13] : memref<128x256xbf16, #tpu.memory_space<vmem>>, vector<128x256xbf16>
    tpu.vector_store %arg4[%c0_12, %c0_13], %26 {strides = array<i32>} : memref<128x256xbf16, #tpu.memory_space<vmem>>, vector<128x256xbf16>,
    return
  }
  func.func @transform_0(%arg0: i32) -> (i32, i32) {
    %c0_i32 = arith.constant 0 : i32
    %c0_i32_0 = arith.constant 0 : i32
    return %arg0, %c0_i32 : i32, i32
  }
  func.func @transform_1(%arg0: i32) -> (i32, i32) {
    %c0_i32 = arith.constant 0 : i32
    %c0_i32_0 = arith.constant 0 : i32
    return %arg0, %c0_i32 : i32, i32
  }
  func.func @transform_2(%arg0: i32) -> (i32, i32) {
    %c0_i32 = arith.constant 0 : i32
    %c0_i32_0 = arith.constant 0 : i32
    return %arg0, %c0_i32 : i32, i32
  }
  func.func @transform_3(%arg0: i32) -> (i32, i32) {
    %c0_i32 = arith.constant 0 : i32
    %c0_i32_0 = arith.constant 0 : i32
    return %arg0, %c0_i32 : i32, i32
  }
  func.func @transform_4(%arg0: i32) -> (i32, i32) {
    %c0_i32 = arith.constant 0 : i32
    %c0_i32_0 = arith.constant 0 : i32
    return %arg0, %c0_i32 : i32, i32
  }
}

</mosaic_0001>

<bundles_post_ra>
// kernel: tpu_custom_call.1
= control target key start
LH: loop header
LB: loop body
LE: loop exit
PB: predicated region body
PF: predicated region fallthrough
CT: control target
= control target key end

     0   :  { %10 = vsyncpa [#allocation3], 0  ;;  %s2454_s0 = inlined_call_operand.hbm [shape: f32[384,256], index: 0, kind: input, shape index: {}]   ;;  %s2455_s1 = inlined_call_operand.hbm [shape: f32[384,256], index: 1, kind: input, shape index: {}]   ;;  %s2456_s2 = inlined_call_operand.hbm [shape: bf16[384,256], index: 2, kind: output, shape index: {0}]   ;;  %s2457_s3 = inlined_call_operand.hbm [shape: bf16[384,256], index: 3, kind: output, shape index: {1}]   ;;  %s2458_s4 = inlined_call_operand.vmem [shape: f32[384,1], index: 4, kind: output, shape index: {2}]  }
   0x1   :  { %12 = vsyncpa [#allocation3 + $0x1], 0 }
   0x2   :  { %13 = vsyncpa [#allocation6], 0 }
   0x3   :  { %15 = vsyncpa [#allocation6 + $0x1], 0 }
   0x4   :  { %16 = vsyncpa [#allocation4], 0 }
   0x5   :  { %18 = vsyncpa [#allocation4 + $0x1], 0 }
   0x6   :  { %19 = vsyncpa [#allocation9], 0 }
   0x7   :  { %21 = vsyncpa [#allocation9 + $0x1], 0  ;;  %s1595_s15 = smov 0   ;;  %s1597_s16 = smov 0  }
   0x8   :  { %s1599_s17 = smov 0   ;;  %s1601_s18 = smov 0  }
   0x9 LB: > { %s1616_s19 = sadd.s32 4294967295, %s1560_s18   ;;  %s1174_s20 = sadd.s32 4294967294, %s1560_s18   ;;  %s1560_s18 = sphi %s1601_s18, %s2524_s18   ;;  %s1556_s17 = sphi %s1599_s17, %s2523_s17   ;;  %s1552_s16 = sphi %s1597_s16, %s2522_s16   ;;  %s1548_s15 = sphi %s1595_s15, %s2521_s15  }
   0xa   : > { %s1620_s21 = sadd.s32 1, %s1560_s18   ;;  %s34_s22 = sadd.s32 1, %s1556_s17 }
   0xb   : > { %s31_s23 = ssub.s32 %s1560_s18, %s1620_s21  ;;  %p41_p0 = scmp.ne.s32.totalorder %s1556_s17, %s1552_s16 }
   0xc   : > { %p32_p1 = scmp.eq.s32.totalorder %s31_s23, 0  ;;  %p42_p2 = scmp.eq.s32.totalorder %s1560_s18, 0 }
   0xd   : > { %p47_p3 = scmp.ne.s32.totalorder %s1552_s16, %s1548_s15  ;;  %p48_p4 = scmp.eq.s32.totalorder %s1616_s19, 0 }
   0xe   : > { %s1632_s24 = scalar_select %p32_p1, %s1556_s17, %s34_s22  }
   0xf   : > { %p1634_p5 = por %p42_p2, %p41_p0  ;;  %p1638_p6 = por %p48_p4, %p47_p3 }
  0x10   : > { %p97_p7 = scmp.eq.s32.totalorder %s1616_s19, 2  ;;  %p103_p8 = scmp.eq.s32.totalorder %s1174_s20, 2 }
  0x11   : > { %s2479_s26 = scalar_select %p1638_p6, 1, 0 }
  0x12   : > { %p1296_p9 = scmp.lt.s32.totalorder %s1560_s18, 3  ;;  %p1644_p10 = por %p97_p7, %p41_p0 }
  0x13   : > { %p1648_p11 = por %p103_p8, %p47_p3  ;;  %s1653_s29 = sand.u32 1, %s1556_s17  }
  0x14   : > { %s2480_s27 = scalar_select %p1644_p10, 1, 0 }
  0x15   : > { %s2481_s28 = scalar_select %p1648_p11, 1, 0 }
  0x16   : > { %s1235_s30 = sshll.u32 %s1560_s18, 12  ;;  %s1177_s5 = sshll.u32 %s1653_s29, 8 }
  0x17   : > { %s1662_s8 = scalar_lea.hbm %s2454_s0, %s1235_s30  ;;  %s179_s9 = scalar_lea.vmem [#allocation2], %s1177_s5 }
  0x18   : > { %s187_s10 = sshll.u32 %s179_s9, 4  ;;  %p1668_p12 = pnand %p1296_p9, %p1634_p5  ;;  %s1672_s10 = int_to_ptr.vmem [resolvable:$true] %s187_s10 }
  0x19   : > { %s176_s12 = scalar_lea.sflag [#allocation3], %s1653_s29  ;;  %s1398_s13 = scalar_lea.hbm %s1662_s8, 4096 }
  0x1a   : > { %p1399_p13 = scmp.ne.s32.totalorder %s1662_s8, %s1398_s13  ;;  %p1400_p0 = pneg %p1668_p12 }
  0x1b   : > { %s1403_s22 = scalar_lea.hbm %s2454_s0, 12288  ;;  %p1404_p3 = scmp.lt.u32.totalorder %s1662_s8, %s2454_s0 }
  0x1c   : > { %p1401_p1 = pnand %p1400_p0, %p1399_p13  ;;  %p1405_p4 = scmp.lt.u32.totalorder %s1403_s22, %s1398_s13 }
  0x1d   : > { %p1407_p7 = scmp.lt.u32.totalorder %s1398_s13, %s1662_s8 }
  0x1e   : > { %p1402_p2 = pneg %p1401_p1  ;;  %p1406_p5 = por %p1405_p4, %p1404_p3 }
  0x20   : > { %p1408_p8 = por %p1407_p7, %p1406_p5 }
  0x22   : > { %p1409_p9 = pnand %p1408_p8, %p1402_p2 }
  0x24   : > { %1412 = shalt.err (!%p1409_p9)
}
  0x25   : > { %s1413_s6 = scalar_lea.vmem %s1672_s10, 4096  ;;  %s1562_s7 = smov [#allocation2]  }
  0x26   : > { %p1414_p13 = scmp.ne.s32.totalorder %s1672_s10, %s1413_s6  ;;  %s1418_s9 = sshll.u32 %s1562_s7, 4  ;;  %s1419_s9 = int_to_ptr.vmem [resolvable:$false] %s1418_s9 }
  0x27   : > { %s1420_s14 = scalar_lea.vmem %s1419_s9, 8192  ;;  %p1421_p10 = scmp.lt.s32.totalorder %s1672_s10, %s1419_s9 }
  0x28   : > { %p1416_p1 = pnand %p1414_p13, %p1400_p0  ;;  %p1422_p3 = scmp.lt.s32.totalorder %s1420_s14, %s1413_s6 }
  0x2a   : > { %p1417_p11 = pneg %p1416_p1  ;;  %p1423_p4 = por %p1422_p3, %p1421_p10 }
  0x2c   : > { %p1424_p5 = pnand %p1423_p4, %p1417_p11 }
  0x2e   : > { %1427 = shalt.err (!%p1424_p5)
}
  0x2f   : > { %s1563_s13 = smov 256   ;;  %s1564_s20 = smov 16  }
  0x30   : > { %1285 = dma.hbm_to_vmem [thread:$0]  (!%p1668_p12), %s1662_s8, 4096, %s1672_s10, %s176_s12, %s1563_s13, %s1563_s13, %s1564_s20  }
  0x31   : > { %p1185_p10 = scmp.ge.s32.totalorder %s1560_s18, 1  ;;  %p217_p11 = scmp.lt.s32.totalorder %s1560_s18, 4 }
  0x32   : > { %s1716_s6 = scalar_lea.hbm %s2455_s1, %s1235_s30  ;;  %s201_s7 = scalar_lea.vmem [#allocation5], %s1177_s5 }
  0x33   : > { %p1707_p2 = pnand %p1185_p10, %p217_p11  ;;  %s209_s9 = sshll.u32 %s201_s7, 4  ;;  %s1720_s9 = int_to_ptr.vmem [resolvable:$true] %s209_s9 }
  0x34   : > { %s198_s8 = scalar_lea.sflag [#allocation6], %s1653_s29  ;;  %s1428_s10 = scalar_lea.hbm %s1716_s6, 4096 }
  0x35   : > { %p1429_p7 = scmp.ne.s32.totalorder %s1716_s6, %s1428_s10  ;;  %s1433_s30 = scalar_lea.hbm %s2455_s1, 12288 }
  0x36   : > { %p1434_p13 = scmp.lt.u32.totalorder %s1716_s6, %s2455_s1  ;;  %p1435_p1 = scmp.lt.u32.totalorder %s1433_s30, %s1428_s10 }
  0x37   : > { %p1431_p8 = pnand %p1429_p7, %p1400_p0  ;;  %p1437_p4 = scmp.lt.u32.totalorder %s1428_s10, %s1716_s6 }
  0x38   : > { %p1436_p3 = por %p1435_p1, %p1434_p13 }
  0x39   : > { %p1432_p9 = pneg %p1431_p8 }
  0x3a   : > { %p1438_p5 = por %p1437_p4, %p1436_p3 }
  0x3c   : > { %p1439_p10 = pnand %p1438_p5, %p1432_p9 }
  0x3e   : > { %1442 = shalt.err (!%p1439_p10)
}
  0x3f   : > { %s1443_s5 = scalar_lea.vmem %s1720_s9, 4096  ;;  %s1565_s7 = smov [#allocation5]  }
  0x40   : > { %p1444_p11 = scmp.ne.s32.totalorder %s1720_s9, %s1443_s5  ;;  %s1448_s12 = sshll.u32 %s1565_s7, 4  ;;  %s1449_s12 = int_to_ptr.vmem [resolvable:$false] %s1448_s12 }
  0x41   : > { %s1450_s14 = scalar_lea.vmem %s1449_s12, 8192  ;;  %p1451_p6 = scmp.lt.s32.totalorder %s1720_s9, %s1449_s12 }
  0x42   : > { %p1446_p7 = pnand %p1444_p11, %p1400_p0  ;;  %p1452_p13 = scmp.lt.s32.totalorder %s1450_s14, %s1443_s5 }
  0x44   : > { %p1447_p8 = pneg %p1446_p7  ;;  %p1453_p1 = por %p1452_p13, %p1451_p6 }
  0x46   : > { %p1454_p3 = pnand %p1453_p1, %p1447_p8 }
  0x48   : > { %1457 = shalt.err (!%p1454_p3)
}
  0x49   : > { %1288 = dma.hbm_to_vmem [thread:$0]  (!%p1668_p12), %s1716_s6, 4096, %s1720_s9, %s198_s8, %s1563_s13, %s1563_s13, %s1564_s20  }
  0x4a   : > { %221 = sbr.rel (%p1707_p2) target bundleno = 457 (0x1c9), region = 28 }
  0x51   : > { %s1754_s10 = sand.u32 1, %s1552_s16   ;;  %p2484_p6 = scmp.ne.s32.totalorder %s2479_s26, 0 }
  0x52   : > { %s1186_s30 = sshll.u32 %s1754_s10, 8  ;;  %s224_s23 = scalar_lea.sflag [#allocation3], %s1754_s10 }
  0x53   : > { %s1758_s11 = scalar_lea.vmem [#allocation2], %s1186_s30 }
  0x54   : > { %1531 = dma.done.wait (%p2484_p6), %s224_s23, 4096  }
  0x55   : > { %1533 = vsyncadd (%p2484_p6), %s224_s23, 4294963200  ;;  %s233_s29 = scalar_lea.sflag [#allocation6], %s1754_s10  ;;  %s1765_s13 = scalar_lea.vmem [#allocation5], %s1186_s30 }
  0x56   : > { %1535 = dma.done.wait (%p2484_p6), %s233_s29, 4096  }
  0x57   : > { %1537 = vsyncadd (%p2484_p6), %s233_s29, 4294963200  ;;  %v1772_v0 = vld [vmem:[%s1758_s11 + $0x20] sm:$0xff]  ;;  %v1775_v1 = vld [vmem:[%s1758_s11 + $0x28] sm:$0xff]  ;;  %s1188_s26 = sshll.u32 %s1754_s10, 7  ;;  %s1271_s6 = sshll.u32 %s1616_s19, 11 }
  0x58   : > { %v1778_v2 = vld [vmem:[%s1758_s11] sm:$0xff]  ;;  %v354_v3 = vmul.f32 %v1772_v0, %v1772_v0  ;;  %v355_v4 = vmul.f32 %v1775_v1, %v1775_v1  ;;  %v1785_v5 = vld [vmem:[%s1758_s11 + $0x8] sm:$0xff]  ;;  %v1790_v7 = vld [vmem:[%s1758_s11 + $0x30] sm:$0xff]  ;;  %s2116_s20 = scalar_lea.vmem [#allocation7], %s1188_s26  ;;  %s2250_s22 = scalar_lea.vmem [#allocation8], %s1188_s26 }
  0x59   : > { %v350_v6 = vmul.f32 %v1778_v2, %v1778_v2  ;;  %v1793_v8 = vld [vmem:[%s1758_s11 + $0x38] sm:$0xff]  ;;  %v351_v9 = vmul.f32 %v1785_v5, %v1785_v5  ;;  %v356_v10 = vmul.f32 %v1790_v7, %v1790_v7  ;;  %v1802_v12 = vld [vmem:[%s1758_s11 + $0x10] sm:$0xff]  ;;  %v1818_v19 = vld [vmem:[%s1758_s11 + $0x40] sm:$0xff]  ;;  %s1000_s9 = sshll.u32 %s2116_s20, 4  ;;  %s2331_s5 = scalar_lea.hbm %s2456_s2, %s1271_s6  ;;  %s2333_s9 = int_to_ptr.vmem [resolvable:$true] %s1000_s9 }
  0x5a   : > { %v357_v11 = vmul.f32 %v1793_v8, %v1793_v8  ;;  %v1805_v13 = vld [vmem:[%s1758_s11 + $0x18] sm:$0xff]  ;;  %v1808_v14 = vld [vmem:[%s1758_s11 + $0x50] sm:$0xff]  ;;  %v388_v15 = vadd.f32 %v355_v4, %v354_v3  ;;  %v352_v16 = vmul.f32 %v1802_v12, %v1802_v12  ;;  %v1821_v20 = vld [vmem:[%s1758_s11 + $0x48] sm:$0xff]  ;;  %v358_v26 = vmul.f32 %v1818_v19, %v1818_v19  ;;  %s976_s7 = scalar_lea.sflag [#allocation4], %s1754_s10  ;;  %s1458_s12 = scalar_lea.vmem %s2333_s9, 2048 }
  0x5b   : > { %v353_v17 = vmul.f32 %v1805_v13, %v1805_v13  ;;  %v1815_v18 = vld [vmem:[%s1758_s11 + $0x58] sm:$0xff]  ;;  %v382_v21 = vadd.f32 %v351_v9, %v350_v6  ;;  %v360_v23 = vmul.f32 %v1808_v14, %v1808_v14  ;;  %v359_v27 = vmul.f32 %v1821_v20, %v1821_v20  ;;  %v1832_v28 = vld [vmem:[%s1758_s11 + $0x70] sm:$0xff]  ;;  %v1838_v30 = vld [vmem:[%s1758_s11 + $0x60] sm:$0xff]  ;;  %p1459_p12 = scmp.ne.s32.totalorder %s2333_s9, %s1458_s12  ;;  %p2519_p0 = scmp.ne.s32.totalorder %s2480_s27, 0 }
  0x5c   : > { %389 = vadd.xlane.f32.xlu1 %v388_v15  ;;  %v391_v22 = vadd.f32 %v357_v11, %v356_v10  ;;  %v361_v24 = vmul.f32 %v1815_v18, %v1815_v18  ;;  %v1835_v29 = vld [vmem:[%s1758_s11 + $0x78] sm:$0xff]  ;;  %v1841_v31 = vld [vmem:[%s1758_s11 + $0x68] sm:$0xff]  ;;  %v364_v33 = vmul.f32 %v1832_v28, %v1832_v28  ;;  %v362_v36 = vmul.f32 %v1838_v30, %v1838_v30  ;;  %v1852_v38 = vld [vmem:[%s1758_s11 + $0x90] sm:$0xff]  ;;  %s1566_s14 = smov [#allocation7]  }
  0x5d   : > { %383 = vadd.xlane.f32.xlu0 %v382_v21  ;;  %v385_v25 = vadd.f32 %v353_v17, %v352_v16  ;;  %v365_v34 = vmul.f32 %v1835_v29, %v1835_v29  ;;  %v394_v35 = vadd.f32 %v359_v27, %v358_v26  ;;  %v363_v37 = vmul.f32 %v1841_v31, %v1841_v31  ;;  %v1855_v39 = vld [vmem:[%s1758_s11 + $0x98] sm:$0xff]  ;;  %v1858_v40 = vld [vmem:[%s1758_s11 + $0x80] sm:$0xff]  ;;  %v1861_v41 = vld [vmem:[%s1758_s11 + $0x88] sm:$0xff]  ;;  %p1460_p2 = pnand %p1459_p12, %p2519_p0  ;;  %s1462_s30 = sshll.u32 %s1566_s14, 4  ;;  %s1463_s30 = int_to_ptr.vmem [resolvable:$false] %s1462_s30 }
  0x5e   : > { %v397_v32 = vadd.f32 %v361_v24, %v360_v23  ;;  %v368_v43 = vmul.f32 %v1852_v38, %v1852_v38  ;;  %v369_v44 = vmul.f32 %v1855_v39, %v1855_v39  ;;  %v366_v46 = vmul.f32 %v1858_v40, %v1858_v40  ;;  %v1872_v48 = vld [vmem:[%s1758_s11 + $0xb0] sm:$0xff]  ;;  %v1875_v49 = vld [vmem:[%s1758_s11 + $0xb8] sm:$0xff]  ;;  %v1878_v50 = vld [vmem:[%s1758_s11 + $0xa0] sm:$0xff]  ;;  %s1464_s23 = scalar_lea.vmem %s1463_s30, 4096  ;;  %p1465_p4 = scmp.lt.s32.totalorder %s2333_s9, %s1463_s30 }
  0x5f   : > { %v403_v42 = vadd.f32 %v365_v34, %v364_v33  ;;  %v400_v45 = vadd.f32 %v363_v37, %v362_v36  ;;  %v367_v47 = vmul.f32 %v1861_v41, %v1861_v41  ;;  %v1881_v51 = vld [vmem:[%s1758_s11 + $0xa8] sm:$0xff]  ;;  %v372_v53 = vmul.f32 %v1872_v48, %v1872_v48  ;;  %v1892_v58 = vld [vmem:[%s1758_s11 + $0xd0] sm:$0xff]  ;;  %v1895_v59 = vld [vmem:[%s1758_s11 + $0xd8] sm:$0xff]  ;;  %p1461_p9 = pneg %p1460_p2  ;;  %p1466_p5 = scmp.lt.s32.totalorder %s1464_s23, %s1458_s12 }
  0x60   : > { %392 = vadd.xlane.f32.xlu1 %v391_v22  ;;  %v409_v52 = vadd.f32 %v369_v44, %v368_v43  ;;  %v373_v54 = vmul.f32 %v1875_v49, %v1875_v49  ;;  %v370_v56 = vmul.f32 %v1878_v50, %v1878_v50  ;;  %v371_v57 = vmul.f32 %v1881_v51, %v1881_v51  ;;  %v1898_v60 = vld [vmem:[%s1758_s11 + $0xc0] sm:$0xff]  ;;  %v1901_v61 = vld [vmem:[%s1758_s11 + $0xc8] sm:$0xff]  ;;  %v1912_v10 = vld [vmem:[%s1758_s11 + $0xf0] sm:$0xff] }
  0x61   : > { %386 = vadd.xlane.f32.xlu0 %v385_v25  ;;  %v406_v55 = vadd.f32 %v367_v47, %v366_v46  ;;  %v376_v63 = vmul.f32 %v1892_v58, %v1892_v58  ;;  %v377_v3 = vmul.f32 %v1895_v59, %v1895_v59  ;;  %v374_v6 = vmul.f32 %v1898_v60, %v1898_v60  ;;  %v1915_v11 = vld [vmem:[%s1758_s11 + $0xf8] sm:$0xff]  ;;  %v1918_v15 = vld [vmem:[%s1758_s11 + $0xe0] sm:$0xff]  ;;  %v1921_v16 = vld [vmem:[%s1758_s11 + $0xe8] sm:$0xff]  ;;  %p1467_p10 = por %p1466_p5, %p1465_p4 }
  0x62   : > { %v415_v62 = vadd.f32 %v373_v54, %v372_v53  ;;  %v412_v4 = vadd.f32 %v371_v57, %v370_v56  ;;  %v375_v9 = vmul.f32 %v1901_v61, %v1901_v61  ;;  %v380_v21 = vmul.f32 %v1912_v10, %v1912_v10  ;;  %v1932_v26 = vld [vmem:[%s1765_s13 + $0x10] sm:$0xff]  ;;  %v1935_v27 = vld [vmem:[%s1765_s13 + $0x18] sm:$0xff]  ;;  %v1941_v33 = vld [vmem:[%s1765_s13 + $0x8] sm:$0xff] }
  0x63   : > { %v421_v17 = vadd.f32 %v377_v3, %v376_v63  ;;  %v381_v22 = vmul.f32 %v1915_v11, %v1915_v11  ;;  %v378_v24 = vmul.f32 %v1918_v15, %v1918_v15  ;;  %v379_v25 = vmul.f32 %v1921_v16, %v1921_v16  ;;  %v1952_v44 = vld [vmem:[%s1765_s13 + $0x30] sm:$0xff]  ;;  %v1958_v46 = vld [vmem:[%s1765_s13 + $0x20] sm:$0xff]  ;;  %v1961_v47 = vld [vmem:[%s1765_s13 + $0x28] sm:$0xff]  ;;  %p1468_p11 = pnand %p1467_p10, %p1461_p9 }
  0x64   : > { %398 = vadd.xlane.f32.xlu1 %v397_v32  ;;  %v418_v23 = vadd.f32 %v375_v9, %v374_v6  ;;  %v1938_v32 = vld [vmem:[%s1765_s13] sm:$0xff]  ;;  %v465_v36 = vmul.f32 %v1935_v27, %v1935_v27  ;;  %v463_v43 = vmul.f32 %v1941_v33, %v1941_v33  ;;  %v468_v53 = vmul.f32 %v1952_v44, %v1952_v44  ;;  %v1975_v63 = vld [vmem:[%s1765_s13 + $0x58] sm:$0xff] }
  0x65   : > { %395 = vadd.xlane.f32.xlu0 %v394_v35  ;;  %v427_v34 = vadd.f32 %v381_v22, %v380_v21  ;;  %v464_v35 = vmul.f32 %v1932_v26, %v1932_v26  ;;  %v424_v37 = vadd.f32 %v379_v25, %v378_v24  ;;  %v466_v56 = vmul.f32 %v1958_v46, %v1958_v46  ;;  %v1978_v3 = vld [vmem:[%s1765_s13 + $0x40] sm:$0xff]  ;;  %v1992_v24 = vld [vmem:[%s1765_s13 + $0x70] sm:$0xff]  ;;  %v1995_v25 = vld [vmem:[%s1765_s13 + $0x78] sm:$0xff] }
  0x66   : > { %v467_v57 = vmul.f32 %v1961_v47, %v1961_v47  ;;  %v470_v22 = vmul.f32 %v1978_v3, %v1978_v3 }
  0x68   : > { %404 = vadd.xlane.f32.xlu1 %v403_v42  ;;  %v462_v42 = vmul.f32 %v1938_v32, %v1938_v32  ;;  %v500_v21 = vadd.f32 %v467_v57, %v466_v56  ;;  %v2018_v56 = vld [vmem:[%s1765_s13 + $0x80] sm:$0xff]  ;;  %v2021_v57 = vld [vmem:[%s1765_s13 + $0x88] sm:$0xff] }
  0x69   : > { %401 = vadd.xlane.f32.xlu0 %v400_v45  ;;  %v1955_v45 = vld [vmem:[%s1765_s13 + $0x38] sm:$0xff]  ;;  %2489 = vst [vmem:[#allocation18_spill] sm:$0xff] %v2018_v56  ;;  %2490 = vst [vmem:[#allocation19_spill] sm:$0xff] %v2021_v57 }
  0x6a   : > { %v469_v54 = vmul.f32 %v1955_v45, %v1955_v45 }
  0x6c   : > { %410 = vadd.xlane.f32.xlu1 %v409_v52  ;;  %v497_v52 = vadd.f32 %v465_v36, %v464_v35  ;;  %v503_v6 = vadd.f32 %v469_v54, %v468_v53  ;;  %v2001_v35 = vld [vmem:[%s1765_s13 + $0x68] sm:$0xff]  ;;  %v2012_v54 = vld [vmem:[%s1765_s13 + $0x90] sm:$0xff] }
  0x6d   : > { %407 = vadd.xlane.f32.xlu0 %v406_v55  ;;  %v494_v55 = vadd.f32 %v463_v43, %v462_v42  ;;  %2486 = vst [vmem:[#allocation15_spill] sm:$0xff] %v2001_v35  ;;  %v477_v42 = vmul.f32 %v1995_v25, %v1995_v25  ;;  %v475_v53 = vmul.f32 %v2001_v35, %v2001_v35  ;;  %2487 = vst [vmem:[#allocation16_spill] sm:$0xff] %v2012_v54  ;;  %v2072_v35 = vld [vmem:[%s1765_s13 + $0xf0] sm:$0xff] }
  0x6e   : > { %2499 = vst [vmem:[#allocation28_spill] sm:$0xff] %v2072_v35 }
  0x70   : > { %416 = vadd.xlane.f32.xlu1 %v415_v62  ;;  %v1972_v62 = vld [vmem:[%s1765_s13 + $0x50] sm:$0xff] }
  0x71   : > { %413 = vadd.xlane.f32.xlu0 %v412_v4  ;;  %v1981_v4 = vld [vmem:[%s1765_s13 + $0x48] sm:$0xff]  ;;  %v472_v9 = vmul.f32 %v1972_v62, %v1972_v62 }
  0x74   : > { %422 = vadd.xlane.f32.xlu1 %v421_v17  ;;  %v473_v17 = vmul.f32 %v1975_v63, %v1975_v63 }
  0x75   : > { %419 = vadd.xlane.f32.xlu0 %v418_v23  ;;  %v471_v23 = vmul.f32 %v1981_v4, %v1981_v4 }
  0x76   : > { %v509_v36 = vadd.f32 %v473_v17, %v472_v9  ;;  %v480_v9 = vmul.f32 %v2012_v54, %v2012_v54  ;;  %v2041_v54 = vld [vmem:[%s1765_s13 + $0xa8] sm:$0xff] }
  0x77   : > { %v506_v43 = vadd.f32 %v471_v23, %v470_v22  ;;  %v478_v22 = vmul.f32 %v2018_v56, %v2018_v56  ;;  %v479_v23 = vmul.f32 %v2021_v57, %v2021_v57  ;;  %2494 = vst [vmem:[#allocation23_spill] sm:$0xff] %v2041_v54 }
  0x78   : > { %428 = vadd.xlane.f32.xlu1 %v427_v34  ;;  %v1998_v34 = vld [vmem:[%s1765_s13 + $0x60] sm:$0xff] }
  0x79   : > { %425 = vadd.xlane.f32.xlu0 %v424_v37  ;;  %2485 = vst [vmem:[#allocation14_spill] sm:$0xff] %v1998_v34  ;;  %v476_v37 = vmul.f32 %v1992_v24, %v1992_v24  ;;  %v518_v57 = vadd.f32 %v479_v23, %v478_v22 }
  0x7c   : > { %498 = vadd.xlane.f32.xlu1 %v497_v52  ;;  %v474_v52 = vmul.f32 %v1998_v34, %v1998_v34  ;;  %v2075_v34 = vld [vmem:[%s1765_s13 + $0xf8] sm:$0xff] }
  0x7d   : > { %495 = vadd.xlane.f32.xlu0 %v494_v55  ;;  %v2015_v55 = vld [vmem:[%s1765_s13 + $0x98] sm:$0xff]  ;;  %2500 = vst [vmem:[#allocation29_spill] sm:$0xff] %v2075_v34 }
  0x7e   : > { %2488 = vst [vmem:[#allocation17_spill] sm:$0xff] %v2015_v55  ;;  %v481_v17 = vmul.f32 %v2015_v55, %v2015_v55  ;;  %v483_v55 = vmul.f32 %v2041_v54, %v2041_v54 }
  0x80   : > { %504 = vadd.xlane.f32.xlu1 %v503_v6  ;;  %v515_v6 = vadd.f32 %v477_v42, %v476_v37  ;;  %v2035_v37 = vld [vmem:[%s1765_s13 + $0xb8] sm:$0xff]  ;;  %v2038_v42 = vld [vmem:[%s1765_s13 + $0xa0] sm:$0xff] }
  0x81   : > { %501 = vadd.xlane.f32.xlu0 %v500_v21  ;;  %v512_v21 = vadd.f32 %v475_v53, %v474_v52  ;;  %2492 = vst [vmem:[#allocation21_spill] sm:$0xff] %v2035_v37  ;;  %2493 = vst [vmem:[#allocation22_spill] sm:$0xff] %v2038_v42  ;;  %v485_v53 = vmul.f32 %v2035_v37, %v2035_v37  ;;  %v482_v56 = vmul.f32 %v2038_v42, %v2038_v42 }
  0x83   : > { %v524_v42 = vadd.f32 %v483_v55, %v482_v56  ;;  %v493_v55 = vmul.f32 %v2075_v34, %v2075_v34 }
  0x84   : > { %510 = vadd.xlane.f32.xlu1 %v509_v36  ;;  %v2032_v36 = vld [vmem:[%s1765_s13 + $0xb0] sm:$0xff] }
  0x85   : > { %507 = vadd.xlane.f32.xlu0 %v506_v43  ;;  %2491 = vst [vmem:[#allocation20_spill] sm:$0xff] %v2032_v36  ;;  %v521_v43 = vadd.f32 %v481_v17, %v480_v9  ;;  %v484_v52 = vmul.f32 %v2032_v36, %v2032_v36  ;;  %v2055_v9 = vld [vmem:[%s1765_s13 + $0xd8] sm:$0xff]  ;;  %v2058_v17 = vld [vmem:[%s1765_s13 + $0xc0] sm:$0xff]  ;;  %v2061_v36 = vld [vmem:[%s1765_s13 + $0xc8] sm:$0xff] }
  0x86   : > { %2496 = vst [vmem:[#allocation25_spill] sm:$0xff] %v2055_v9  ;;  %2497 = vst [vmem:[#allocation26_spill] sm:$0xff] %v2058_v17  ;;  %v489_v23 = vmul.f32 %v2055_v9, %v2055_v9  ;;  %v486_v54 = vmul.f32 %v2058_v17, %v2058_v17  ;;  %v487_v37 = vmul.f32 %v2061_v36, %v2061_v36 }
  0x87   : > { %2498 = vst [vmem:[#allocation27_spill] sm:$0xff] %v2061_v36 }
  0x88   : > { %516 = vadd.xlane.f32.xlu1 %v515_v6  ;;  %v2052_v6 = vld [vmem:[%s1765_s13 + $0xd0] sm:$0xff]  ;;  %v530_v56 = vadd.f32 %v487_v37, %v486_v54 }
  0x89   : > { %513 = vadd.xlane.f32.xlu0 %v512_v21  ;;  %2495 = vst [vmem:[#allocation24_spill] sm:$0xff] %v2052_v6  ;;  %v527_v21 = vadd.f32 %v485_v53, %v484_v52  ;;  %v488_v22 = vmul.f32 %v2052_v6, %v2052_v6  ;;  %v2081_v52 = vld [vmem:[%s1765_s13 + $0xe8] sm:$0xff] }
  0x8a   : > { %2501 = vst [vmem:[#allocation30_spill] sm:$0xff] %v2081_v52  ;;  %v491_v17 = vmul.f32 %v2081_v52, %v2081_v52 }
  0x8b   : > { %v533_v53 = vadd.f32 %v489_v23, %v488_v22 }
  0x8c   : > { %522 = vadd.xlane.f32.xlu1 %v521_v43  ;;  %v2078_v43 = vld [vmem:[%s1765_s13 + $0xe0] sm:$0xff] }
  0x8d   : > { %519 = vadd.xlane.f32.xlu0 %v518_v57  ;;  %v492_v57 = vmul.f32 %v2072_v35, %v2072_v35  ;;  %v490_v36 = vmul.f32 %v2078_v43, %v2078_v43 }
  0x8f   : > { %v539_v9 = vadd.f32 %v493_v55, %v492_v57  ;;  %v536_v6 = vadd.f32 %v491_v17, %v490_v36 }
  0x90   : > { %528 = vadd.xlane.f32.xlu1 %v527_v21 }
  0x91   : > { %525 = vadd.xlane.f32.xlu0 %v524_v42 }
  0x94   : > { %534 = vadd.xlane.f32.xlu1 %v533_v53 }
  0x95   : > { %531 = vadd.xlane.f32.xlu0 %v530_v56 }
  0x98   : > { %540 = vadd.xlane.f32.xlu1 %v539_v9 }
  0x99   : > { %537 = vadd.xlane.f32.xlu0 %v536_v6 }
  0xe9   : > { %v390_v21 = vpop.xlane.xlu1 %389 }
  0xea   : > { %v432_v22 = vmax.f32 %v390_v21, 1e-24  ;;  %v384_v23 = vpop.xlane.xlu0 %383 }
  0xeb   : > { %v430_v35 = vmax.f32 %v384_v23, 1e-24 }
  0xec   : > { %1334 = vrsqrt.f32 %v432_v22 }
  0xed   : > { %1336 = vrsqrt.f32 %v430_v35  ;;  %v393_v42 = vpop.xlane.xlu1 %392 }
  0xee   : > { %v433_v54 = vmax.f32 %v393_v42, 1e-24  ;;  %v387_v37 = vpop.xlane.xlu0 %386 }
  0xef   : > { %v431_v34 = vmax.f32 %v387_v37, 1e-24 }
  0xf0   : > { %1338 = vrsqrt.f32 %v433_v54 }
  0xf1   : > { %1340 = vrsqrt.f32 %v431_v34  ;;  %v399_v52 = vpop.xlane.xlu1 %398 }
  0xf2   : > { %v435_v53 = vmax.f32 %v399_v52, 1e-24  ;;  %v396_v57 = vpop.xlane.xlu0 %395 }
  0xf3   : > { %v434_v55 = vmax.f32 %v396_v57, 1e-24 }
  0xf4   : > { %1342 = vrsqrt.f32 %v435_v53 }
  0xf5   : > { %1344 = vrsqrt.f32 %v434_v55  ;;  %v405_v36 = vpop.xlane.xlu1 %404 }
  0xf6   : > { %v1335_v6 = vpop.eup %1334  ;;  %v437_v9 = vmax.f32 %v405_v36, 1e-24  ;;  %v402_v17 = vpop.xlane.xlu0 %401 }
  0xf7   : > { %v1337_v56 = vpop.eup %1336  ;;  %v576_v21 = vmul.f32 2.0, %v1335_v6  ;;  %v436_v35 = vmax.f32 %v402_v17, 1e-24 }
  0xf8   : > { %v574_v22 = vmul.f32 2.0, %v1337_v56  ;;  %1346 = vrsqrt.f32 %v437_v9 }
  0xf9   : > { %1348 = vrsqrt.f32 %v436_v35  ;;  %v411_v23 = vpop.xlane.xlu1 %410  ;;  %v2093_v34 = vmul.f32 %v576_v21, %v1772_v0  ;;  %v2096_v52 = vmul.f32 %v576_v21, %v1775_v1 }
  0xfa   : > { %v1339_v42 = vpop.eup %1338  ;;  %v439_v54 = vmax.f32 %v411_v23, 1e-24  ;;  %v408_v37 = vpop.xlane.xlu0 %407  ;;  %v2099_v53 = vmul.f32 %v574_v22, %v1778_v2  ;;  %v2102_v57 = vmul.f32 %v574_v22, %v1785_v5 }
  0xfb   : > { %v1341_v55 = vpop.eup %1340  ;;  %v577_v36 = vmul.f32 2.0, %v1339_v42  ;;  %v438_v6 = vmax.f32 %v408_v37, 1e-24  ;;  %v1240_v0 = vpack.c.bf16 %v2096_v52, %v2093_v34 }
  0xfc   : > { %v575_v9 = vmul.f32 2.0, %v1341_v55  ;;  %1350 = vrsqrt.f32 %v439_v54  ;;  %v1238_v1 = vpack.c.bf16 %v2102_v57, %v2099_v53 }
  0xfd   : > { %1352 = vrsqrt.f32 %v438_v6  ;;  %v417_v17 = vpop.xlane.xlu1 %416  ;;  %v2109_v56 = vmul.f32 %v577_v36, %v1790_v7  ;;  %v2112_v2 = vmul.f32 %v577_v36, %v1793_v8  ;;  %849 = vst [vmem:[%s2116_s20 + $0x10] sm:$0xff] %v1240_v0 }
  0xfe   : > { %v1343_v5 = vpop.eup %1342  ;;  %v441_v21 = vmax.f32 %v417_v17, 1e-24  ;;  %v414_v35 = vpop.xlane.xlu0 %413  ;;  %v2120_v22 = vmul.f32 %v575_v9, %v1802_v12  ;;  %v2123_v23 = vmul.f32 %v575_v9, %v1805_v13  ;;  %847 = vst [vmem:[%s2116_s20] sm:$0xff] %v1238_v1 }
  0xff   : > { %v1345_v7 = vpop.eup %1344  ;;  %v579_v8 = vmul.f32 2.0, %v1343_v5  ;;  %v440_v42 = vmax.f32 %v414_v35, 1e-24  ;;  %v1241_v54 = vpack.c.bf16 %v2112_v2, %v2109_v56 }
 0x100   : > { %v578_v37 = vmul.f32 2.0, %v1345_v7  ;;  %1354 = vrsqrt.f32 %v441_v21  ;;  %v1239_v55 = vpack.c.bf16 %v2123_v23, %v2120_v22 }
 0x101   : > { %1356 = vrsqrt.f32 %v440_v42  ;;  %v423_v36 = vpop.xlane.xlu1 %422  ;;  %850 = vst [vmem:[%s2116_s20 + $0x18] sm:$0xff] %v1241_v54  ;;  %v2132_v12 = vmul.f32 %v579_v8, %v1808_v14  ;;  %v2135_v13 = vmul.f32 %v579_v8, %v1815_v18 }
 0x102   : > { %v1347_v6 = vpop.eup %1346  ;;  %v443_v0 = vmax.f32 %v423_v36, 1e-24  ;;  %v420_v9 = vpop.xlane.xlu0 %419  ;;  %848 = vst [vmem:[%s2116_s20 + $0x8] sm:$0xff] %v1239_v55  ;;  %v2139_v1 = vmul.f32 %v578_v37, %v1818_v19  ;;  %v2142_v17 = vmul.f32 %v578_v37, %v1821_v20 }
 0x103   : > { %v1349_v5 = vpop.eup %1348  ;;  %v581_v21 = vmul.f32 2.0, %v1347_v6  ;;  %v442_v35 = vmax.f32 %v420_v9, 1e-24  ;;  %v1243_v14 = vpack.c.bf16 %v2135_v13, %v2132_v12 }
 0x104   : > { %v580_v18 = vmul.f32 2.0, %v1349_v5  ;;  %1358 = vrsqrt.f32 %v443_v0  ;;  %v1242_v7 = vpack.c.bf16 %v2142_v17, %v2139_v1 }
 0x105   : > { %1360 = vrsqrt.f32 %v442_v35  ;;  %v429_v8 = vpop.xlane.xlu1 %428  ;;  %852 = vst [vmem:[%s2116_s20 + $0x28] sm:$0xff] %v1243_v14  ;;  %v2150_v19 = vmul.f32 %v581_v21, %v1832_v28  ;;  %v2153_v20 = vmul.f32 %v581_v21, %v1835_v29 }
 0x106   : > { %v1351_v42 = vpop.eup %1350  ;;  %v445_v54 = vmax.f32 %v429_v8, 1e-24  ;;  %v426_v37 = vpop.xlane.xlu0 %425  ;;  %851 = vst [vmem:[%s2116_s20 + $0x20] sm:$0xff] %v1242_v7  ;;  %v2157_v55 = vmul.f32 %v580_v18, %v1838_v30  ;;  %v2160_v36 = vmul.f32 %v580_v18, %v1841_v31 }
 0x107   : > { %v1353_v6 = vpop.eup %1352  ;;  %v583_v0 = vmul.f32 2.0, %v1351_v42  ;;  %v444_v9 = vmax.f32 %v426_v37, 1e-24  ;;  %v1245_v28 = vpack.c.bf16 %v2153_v20, %v2150_v19 }
 0x108   : > { %v582_v29 = vmul.f32 2.0, %v1353_v6  ;;  %1362 = vrsqrt.f32 %v445_v54  ;;  %v1244_v5 = vpack.c.bf16 %v2160_v36, %v2157_v55 }
 0x109   : > { %1364 = vrsqrt.f32 %v444_v9  ;;  %v499_v21 = vpop.xlane.xlu1 %498  ;;  %854 = vst [vmem:[%s2116_s20 + $0x38] sm:$0xff] %v1245_v28  ;;  %v2168_v30 = vmul.f32 %v583_v0, %v1852_v38  ;;  %v2171_v31 = vmul.f32 %v583_v0, %v1855_v39 }
 0x10a   : > { %v1355_v35 = vpop.eup %1354  ;;  %v543_v14 = vmax.f32 %v499_v21, 1e-24  ;;  %v496_v18 = vpop.xlane.xlu0 %495  ;;  %853 = vst [vmem:[%s2116_s20 + $0x30] sm:$0xff] %v1244_v5  ;;  %v2175_v7 = vmul.f32 %v582_v29, %v1858_v40  ;;  %v2178_v8 = vmul.f32 %v582_v29, %v1861_v41 }
 0x10b   : > { %v1357_v42 = vpop.eup %1356  ;;  %v585_v54 = vmul.f32 2.0, %v1355_v35  ;;  %v542_v37 = vmax.f32 %v496_v18, 1e-24  ;;  %v1247_v38 = vpack.c.bf16 %v2171_v31, %v2168_v30 }
 0x10c   : > { %v584_v39 = vmul.f32 2.0, %v1357_v42  ;;  %1366 = vrsqrt.f32 %v543_v14  ;;  %v1246_v6 = vpack.c.bf16 %v2178_v8, %v2175_v7 }
 0x10d   : > { %1368 = vrsqrt.f32 %v542_v37  ;;  %v505_v0 = vpop.xlane.xlu1 %504  ;;  %856 = vst [vmem:[%s2116_s20 + $0x48] sm:$0xff] %v1247_v38  ;;  %v2186_v40 = vmul.f32 %v585_v54, %v1872_v48  ;;  %v2189_v41 = vmul.f32 %v585_v54, %v1875_v49 }
 0x10e   : > { %v1359_v9 = vpop.eup %1358  ;;  %v545_v28 = vmax.f32 %v505_v0, 1e-24  ;;  %v502_v29 = vpop.xlane.xlu0 %501  ;;  %855 = vst [vmem:[%s2116_s20 + $0x40] sm:$0xff] %v1246_v6  ;;  %v2193_v5 = vmul.f32 %v584_v39, %v1878_v50  ;;  %v2196_v21 = vmul.f32 %v584_v39, %v1881_v51 }
 0x10f   : > { %v1361_v35 = vpop.eup %1360  ;;  %v587_v14 = vmul.f32 2.0, %v1359_v9  ;;  %v544_v18 = vmax.f32 %v502_v29, 1e-24  ;;  %v1249_v48 = vpack.c.bf16 %v2189_v41, %v2186_v40 }
 0x110   : > { %v586_v49 = vmul.f32 2.0, %v1361_v35  ;;  %1370 = vrsqrt.f32 %v545_v28  ;;  %v1248_v42 = vpack.c.bf16 %v2196_v21, %v2193_v5 }
 0x111   : > { %1372 = vrsqrt.f32 %v544_v18  ;;  %v511_v54 = vpop.xlane.xlu1 %510  ;;  %858 = vst [vmem:[%s2116_s20 + $0x58] sm:$0xff] %v1249_v48  ;;  %v2204_v50 = vmul.f32 %v587_v14, %v1892_v58  ;;  %v2207_v51 = vmul.f32 %v587_v14, %v1895_v59 }
 0x112   : > { %v1363_v37 = vpop.eup %1362  ;;  %v547_v38 = vmax.f32 %v511_v54, 1e-24  ;;  %v508_v39 = vpop.xlane.xlu0 %507  ;;  %857 = vst [vmem:[%s2116_s20 + $0x50] sm:$0xff] %v1248_v42  ;;  %v2211_v6 = vmul.f32 %v586_v49, %v1898_v60  ;;  %v2214_v0 = vmul.f32 %v586_v49, %v1901_v61 }
 0x113   : > { %v1365_v9 = vpop.eup %1364  ;;  %v589_v28 = vmul.f32 2.0, %v1363_v37  ;;  %v546_v29 = vmax.f32 %v508_v39, 1e-24  ;;  %v1251_v58 = vpack.c.bf16 %v2207_v51, %v2204_v50 }
 0x114   : > { %v588_v59 = vmul.f32 2.0, %v1365_v9  ;;  %1374 = vrsqrt.f32 %v547_v38  ;;  %v1250_v35 = vpack.c.bf16 %v2214_v0, %v2211_v6 }
 0x115   : > { %1376 = vrsqrt.f32 %v546_v29  ;;  %v517_v14 = vpop.xlane.xlu1 %516  ;;  %860 = vst [vmem:[%s2116_s20 + $0x68] sm:$0xff] %v1251_v58  ;;  %v2222_v60 = vmul.f32 %v589_v28, %v1912_v10  ;;  %v2225_v61 = vmul.f32 %v589_v28, %v1915_v11 }
 0x116   : > { %v1367_v18 = vpop.eup %1366  ;;  %v549_v48 = vmax.f32 %v517_v14, 1e-24  ;;  %v514_v49 = vpop.xlane.xlu0 %513  ;;  %859 = vst [vmem:[%s2116_s20 + $0x60] sm:$0xff] %v1250_v35  ;;  %v2229_v42 = vmul.f32 %v588_v59, %v1918_v15  ;;  %v2232_v54 = vmul.f32 %v588_v59, %v1921_v16 }
 0x117   : > { %v1369_v37 = vpop.eup %1368  ;;  %v548_v38 = vmax.f32 %v514_v49, 1e-24  ;;  %v624_v39 = vmul.f32 %v1367_v18, %v1932_v26  ;;  %v625_v10 = vmul.f32 %v1367_v18, %v1935_v27  ;;  %v1253_v11 = vpack.c.bf16 %v2225_v61, %v2222_v60 }
 0x118   : > { %1378 = vrsqrt.f32 %v549_v48  ;;  %v622_v9 = vmul.f32 %v1369_v37, %v1938_v32  ;;  %v623_v15 = vmul.f32 %v1369_v37, %v1941_v33  ;;  %v1252_v28 = vpack.c.bf16 %v2232_v54, %v2229_v42 }
 0x119   : > { %1380 = vrsqrt.f32 %v548_v38  ;;  %v523_v16 = vpop.xlane.xlu1 %522  ;;  %v656_v29 = vmul.f32 %v624_v39, %v2120_v22  ;;  %v657_v26 = vmul.f32 %v625_v10, %v2123_v23  ;;  %v1255_v27 = vpack.c.bf16 %v625_v10, %v624_v39  ;;  %862 = vst [vmem:[%s2116_s20 + $0x78] sm:$0xff] %v1253_v11 }
 0x11a   : > { %v1371_v58 = vpop.eup %1370  ;;  %v551_v59 = vmax.f32 %v523_v16, 1e-24  ;;  %v520_v35 = vpop.xlane.xlu0 %519  ;;  %v654_v14 = vmul.f32 %v622_v9, %v2099_v53  ;;  %v655_v32 = vmul.f32 %v623_v15, %v2102_v57  ;;  %v1254_v33 = vpack.c.bf16 %v623_v15, %v622_v9  ;;  %861 = vst [vmem:[%s2116_s20 + $0x70] sm:$0xff] %v1252_v28 }
 0x11b   : > { %v1373_v18 = vpop.eup %1372  ;;  %v550_v48 = vmax.f32 %v520_v35, 1e-24  ;;  %v689_v49 = vadd.f32 %v657_v26, %v656_v29  ;;  %960 = vst [vmem:[%s2250_s22 + $0x8] sm:$0xff] %v1255_v27  ;;  %v628_v22 = vmul.f32 %v1371_v58, %v1952_v44  ;;  %v629_v23 = vmul.f32 %v1371_v58, %v1955_v45 }
 0x11c   : > { %1382 = vrsqrt.f32 %v551_v59  ;;  %v686_v37 = vadd.f32 %v655_v32, %v654_v14  ;;  %959 = vst [vmem:[%s2250_s22] sm:$0xff] %v1254_v33  ;;  %v626_v53 = vmul.f32 %v1373_v18, %v1958_v46  ;;  %v627_v57 = vmul.f32 %v1373_v18, %v1961_v47 }
 0x11d   : > { %1384 = vrsqrt.f32 %v550_v48  ;;  %v529_v38 = vpop.xlane.xlu1 %528  ;;  %690 = vadd.xlane.f32.xlu1 %v689_v49  ;;  %v660_v39 = vmul.f32 %v628_v22, %v2109_v56  ;;  %v661_v10 = vmul.f32 %v629_v23, %v2112_v2  ;;  %v1257_v11 = vpack.c.bf16 %v629_v23, %v628_v22  ;;  %v2502_v22 = vld [vmem:[#allocation14_spill] sm:$0xff] }
 0x11e   : > { %v1375_v44 = vpop.eup %1374  ;;  %v553_v9 = vmax.f32 %v529_v38, 1e-24  ;;  %687 = vadd.xlane.f32.xlu0 %v686_v37  ;;  %v526_v45 = vpop.xlane.xlu0 %525  ;;  %v658_v15 = vmul.f32 %v626_v53, %v2093_v34  ;;  %v659_v46 = vmul.f32 %v627_v57, %v2096_v52  ;;  %v1256_v28 = vpack.c.bf16 %v627_v57, %v626_v53  ;;  %v2503_v37 = vld [vmem:[#allocation15_spill] sm:$0xff] }
 0x11f   : > { %v1377_v47 = vpop.eup %1376  ;;  %v552_v16 = vmax.f32 %v526_v45, 1e-24  ;;  %v695_v29 = vadd.f32 %v661_v10, %v660_v39  ;;  %962 = vst [vmem:[%s2250_s22 + $0x18] sm:$0xff] %v1257_v11  ;;  %v632_v26 = vmul.f32 %v1375_v44, %v1972_v62  ;;  %v633_v56 = vmul.f32 %v1375_v44, %v1975_v63 }
 0x120   : > { %1386 = vrsqrt.f32 %v553_v9  ;;  %v692_v2 = vadd.f32 %v659_v46, %v658_v15  ;;  %961 = vst [vmem:[%s2250_s22 + $0x10] sm:$0xff] %v1256_v28  ;;  %v630_v27 = vmul.f32 %v1377_v47, %v1978_v3  ;;  %v631_v58 = vmul.f32 %v1377_v47, %v1981_v4  ;;  %v2504_v46 = vld [vmem:[#allocation16_spill] sm:$0xff] }
 0x121   : > { %1388 = vrsqrt.f32 %v552_v16  ;;  %v535_v34 = vpop.xlane.xlu1 %534  ;;  %696 = vadd.xlane.f32.xlu1 %v695_v29  ;;  %v664_v52 = vmul.f32 %v632_v26, %v2132_v12  ;;  %v665_v59 = vmul.f32 %v633_v56, %v2135_v13  ;;  %v1259_v35 = vpack.c.bf16 %v633_v56, %v632_v26  ;;  %v2506_v16 = vld [vmem:[#allocation18_spill] sm:$0xff]  ;;  %v2507_v26 = vld [vmem:[#allocation19_spill] sm:$0xff] }
 0x122   : > { %v1379_v62 = vpop.eup %1378  ;;  %v555_v14 = vmax.f32 %v535_v34, 1e-24  ;;  %693 = vadd.xlane.f32.xlu0 %v692_v2  ;;  %v532_v63 = vpop.xlane.xlu0 %531  ;;  %v662_v32 = vmul.f32 %v630_v27, %v2139_v1  ;;  %v663_v3 = vmul.f32 %v631_v58, %v2142_v17  ;;  %v1258_v33 = vpack.c.bf16 %v631_v58, %v630_v27 }
 0x123   : > { %v1381_v4 = vpop.eup %1380  ;;  %v554_v18 = vmax.f32 %v532_v63, 1e-24  ;;  %v701_v48 = vadd.f32 %v665_v59, %v664_v52  ;;  %964 = vst [vmem:[%s2250_s22 + $0x28] sm:$0xff] %v1259_v35  ;;  %v636_v49 = vmul.f32 %v1379_v62, %v1992_v24  ;;  %v637_v12 = vmul.f32 %v1379_v62, %v1995_v25  ;;  %v2508_v62 = vld [vmem:[#allocation20_spill] sm:$0xff]  ;;  %v2509_v63 = vld [vmem:[#allocation21_spill] sm:$0xff] }
 0x124   : > { %1390 = vrsqrt.f32 %v555_v14  ;;  %v698_v13 = vadd.f32 %v663_v3, %v662_v32  ;;  %963 = vst [vmem:[%s2250_s22 + $0x20] sm:$0xff] %v1258_v33  ;;  %v634_v23 = vmul.f32 %v1381_v4, %v2502_v22  ;;  %v635_v53 = vmul.f32 %v1381_v4, %v2503_v37  ;;  %v2511_v33 = vld [vmem:[#allocation23_spill] sm:$0xff]  ;;  %v2512_v37 = vld [vmem:[#allocation24_spill] sm:$0xff] }
 0x125   : > { %1392 = vrsqrt.f32 %v554_v18  ;;  %v541_v1 = vpop.xlane.xlu1 %540  ;;  %702 = vadd.xlane.f32.xlu1 %v701_v48  ;;  %v668_v17 = vmul.f32 %v636_v49, %v2150_v19  ;;  %v669_v57 = vmul.f32 %v637_v12, %v2153_v20  ;;  %v1261_v38 = vpack.c.bf16 %v637_v12, %v636_v49  ;;  %v2505_v19 = vld [vmem:[#allocation17_spill] sm:$0xff] }
 0x126   : > { %v1383_v24 = vpop.eup %1382  ;;  %v557_v39 = vmax.f32 %v541_v1, 1e-24  ;;  %699 = vadd.xlane.f32.xlu0 %v698_v13  ;;  %v538_v25 = vpop.xlane.xlu0 %537  ;;  %v666_v10 = vmul.f32 %v634_v23, %v2157_v55  ;;  %v667_v11 = vmul.f32 %v635_v53, %v2160_v36  ;;  %v1260_v44 = vpack.c.bf16 %v635_v53, %v634_v23  ;;  %v2513_v1 = vld [vmem:[#allocation25_spill] sm:$0xff] }
 0x127   : > { %v1385_v9 = vpop.eup %1384  ;;  %v556_v45 = vmax.f32 %v538_v25, 1e-24  ;;  %v707_v15 = vadd.f32 %v669_v57, %v668_v17  ;;  %966 = vst [vmem:[%s2250_s22 + $0x38] sm:$0xff] %v1261_v38  ;;  %v640_v28 = vmul.f32 %v1383_v24, %v2504_v46  ;;  %v641_v47 = vmul.f32 %v1383_v24, %v2505_v19  ;;  %v2515_v38 = vld [vmem:[#allocation27_spill] sm:$0xff] }
 0x128   : > { %1394 = vrsqrt.f32 %v557_v39  ;;  %v704_v20 = vadd.f32 %v667_v11, %v666_v10  ;;  %965 = vst [vmem:[%s2250_s22 + $0x30] sm:$0xff] %v1260_v44  ;;  %v638_v29 = vmul.f32 %v1385_v9, %v2506_v16  ;;  %v639_v56 = vmul.f32 %v1385_v9, %v2507_v26 }
 0x129   : > { %1396 = vrsqrt.f32 %v556_v45  ;;  %708 = vadd.xlane.f32.xlu1 %v707_v15  ;;  %v672_v55 = vmul.f32 %v640_v28, %v2168_v30  ;;  %v673_v36 = vmul.f32 %v641_v47, %v2171_v31  ;;  %v1263_v2 = vpack.c.bf16 %v641_v47, %v640_v28  ;;  %v2510_v30 = vld [vmem:[#allocation22_spill] sm:$0xff]  ;;  %v2516_v15 = vld [vmem:[#allocation28_spill] sm:$0xff]  ;;  %v2517_v28 = vld [vmem:[#allocation29_spill] sm:$0xff] }
 0x12a   : > { %v1387_v27 = vpop.eup %1386  ;;  %705 = vadd.xlane.f32.xlu0 %v704_v20  ;;  %v670_v58 = vmul.f32 %v638_v29, %v2175_v7  ;;  %v671_v34 = vmul.f32 %v639_v56, %v2178_v8  ;;  %v1262_v52 = vpack.c.bf16 %v639_v56, %v638_v29  ;;  %v2518_v47 = vld [vmem:[#allocation30_spill] sm:$0xff] }
 0x12b   : > { %v1389_v59 = vpop.eup %1388  ;;  %v713_v35 = vadd.f32 %v673_v36, %v672_v55  ;;  %968 = vst [vmem:[%s2250_s22 + $0x48] sm:$0xff] %v1263_v2  ;;  %v644_v14 = vmul.f32 %v1387_v27, %v2508_v62  ;;  %v645_v32 = vmul.f32 %v1387_v27, %v2509_v63 }
 0x12c   : > { %v710_v3 = vadd.f32 %v671_v34, %v670_v58  ;;  %967 = vst [vmem:[%s2250_s22 + $0x40] sm:$0xff] %v1262_v52  ;;  %v642_v31 = vmul.f32 %v1389_v59, %v2510_v30  ;;  %v643_v4 = vmul.f32 %v1389_v59, %v2511_v33 }
 0x12d   : > { %714 = vadd.xlane.f32.xlu1 %v713_v35  ;;  %v676_v7 = vmul.f32 %v644_v14, %v2186_v40  ;;  %v677_v8 = vmul.f32 %v645_v32, %v2189_v41  ;;  %v1265_v18 = vpack.c.bf16 %v645_v32, %v644_v14  ;;  %v2514_v40 = vld [vmem:[#allocation26_spill] sm:$0xff] }
 0x12e   : > { %v1391_v48 = vpop.eup %1390  ;;  %711 = vadd.xlane.f32.xlu0 %v710_v3  ;;  %v674_v49 = vmul.f32 %v642_v31, %v2193_v5  ;;  %v675_v12 = vmul.f32 %v643_v4, %v2196_v21  ;;  %v1264_v13 = vpack.c.bf16 %v643_v4, %v642_v31 }
 0x12f   : > { %v1393_v22 = vpop.eup %1392  ;;  %v719_v23 = vadd.f32 %v677_v8, %v676_v7  ;;  %970 = vst [vmem:[%s2250_s22 + $0x58] sm:$0xff] %v1265_v18  ;;  %v648_v53 = vmul.f32 %v1391_v48, %v2512_v37  ;;  %v649_v17 = vmul.f32 %v1391_v48, %v2513_v1 }
 0x130   : > { %v716_v57 = vadd.f32 %v675_v12, %v674_v49  ;;  %969 = vst [vmem:[%s2250_s22 + $0x50] sm:$0xff] %v1264_v13  ;;  %v646_v41 = vmul.f32 %v1393_v22, %v2514_v40  ;;  %v647_v24 = vmul.f32 %v1393_v22, %v2515_v38 }
 0x131   : > { %720 = vadd.xlane.f32.xlu1 %v719_v23  ;;  %v680_v5 = vmul.f32 %v648_v53, %v2204_v50  ;;  %v681_v21 = vmul.f32 %v649_v17, %v2207_v51  ;;  %v1267_v39 = vpack.c.bf16 %v649_v17, %v648_v53 }
 0x132   : > { %v1395_v25 = vpop.eup %1394  ;;  %717 = vadd.xlane.f32.xlu0 %v716_v57  ;;  %v678_v10 = vmul.f32 %v646_v41, %v2211_v6  ;;  %v679_v11 = vmul.f32 %v647_v24, %v2214_v0  ;;  %v1266_v44 = vpack.c.bf16 %v647_v24, %v646_v41 }
 0x133   : > { %v1397_v9 = vpop.eup %1396  ;;  %v725_v45 = vadd.f32 %v681_v21, %v680_v5  ;;  %972 = vst [vmem:[%s2250_s22 + $0x68] sm:$0xff] %v1267_v39  ;;  %v652_v46 = vmul.f32 %v1395_v25, %v2516_v15  ;;  %v653_v19 = vmul.f32 %v1395_v25, %v2517_v28 }
 0x134   : > { %v722_v50 = vadd.f32 %v679_v11, %v678_v10  ;;  %971 = vst [vmem:[%s2250_s22 + $0x60] sm:$0xff] %v1266_v44  ;;  %v650_v51 = vmul.f32 %v1397_v9, %v2078_v43  ;;  %v651_v20 = vmul.f32 %v1397_v9, %v2518_v47 }
 0x135   : > { %726 = vadd.xlane.f32.xlu1 %v725_v45  ;;  %v684_v6 = vmul.f32 %v652_v46, %v2222_v60  ;;  %v685_v0 = vmul.f32 %v653_v19, %v2225_v61  ;;  %v1269_v16 = vpack.c.bf16 %v653_v19, %v652_v46 }
 0x136   : > { %723 = vadd.xlane.f32.xlu0 %v722_v50  ;;  %v682_v29 = vmul.f32 %v650_v51, %v2229_v42  ;;  %v683_v26 = vmul.f32 %v651_v20, %v2232_v54  ;;  %v1268_v56 = vpack.c.bf16 %v651_v20, %v650_v51 }
 0x137   : > { %v731_v43 = vadd.f32 %v685_v0, %v684_v6  ;;  %974 = vst [vmem:[%s2250_s22 + $0x78] sm:$0xff] %v1269_v16 }
 0x138   : > { %v728_v55 = vadd.f32 %v683_v26, %v682_v29  ;;  %973 = vst [vmem:[%s2250_s22 + $0x70] sm:$0xff] %v1268_v56 }
 0x139   : > { %732 = vadd.xlane.f32.xlu1 %v731_v43 }
 0x13a   : > { %729 = vadd.xlane.f32.xlu0 %v728_v55 }
 0x13b   : > { %1471 = shalt.err (!%p1468_p11)
}
 0x13c   : > { %s1472_s11 = scalar_lea.hbm %s2331_s5, 2048  ;;  %s1476_s26 = scalar_lea.hbm %s2456_s2, 6144 }
 0x13d   : > { %p1473_p7 = scmp.ne.s32.totalorder %s2331_s5, %s1472_s11  ;;  %p1477_p1 = scmp.lt.u32.totalorder %s2331_s5, %s2456_s2 }
 0x13e   : > { %p1478_p3 = scmp.lt.u32.totalorder %s1476_s26, %s1472_s11  ;;  %p1480_p12 = scmp.lt.u32.totalorder %s1472_s11, %s2331_s5 }
 0x13f   : > { %p1474_p8 = pnand %p1473_p7, %p2519_p0 }
 0x140   : > { %p1479_p6 = por %p1478_p3, %p1477_p1 }
 0x141   : > { %p1475_p13 = pneg %p1474_p8 }
 0x142   : > { %p1481_p2 = por %p1480_p12, %p1479_p6 }
 0x144   : > { %p1482_p9 = pnand %p1481_p2, %p1475_p13 }
 0x146   : > { %1485 = shalt.err (!%p1482_p9)
}
 0x147   : > { %s1567_s25 = smov 128   ;;  %s1568_s12 = smov 8  }
 0x148   : > { %1278 = dma.vmem_to_hbm [thread:$0]  (%p2519_p0), %s2333_s9, 2048, %s2331_s5, %s976_s7, %s1567_s25, %s1567_s25, %s1568_s12  }
 0x149   : > { %s2367_s23 = scalar_lea.hbm %s2457_s3, %s1271_s6  ;;  %s1017_s11 = sshll.u32 %s2250_s22, 4  ;;  %s2370_s11 = int_to_ptr.vmem [resolvable:$true] %s1017_s11 }
 0x14a   : > { %s981_s29 = scalar_lea.sflag [#allocation9], %s1754_s10  ;;  %s1486_s13 = scalar_lea.vmem %s2370_s11, 2048 }
 0x14b   : > { %p1487_p4 = scmp.ne.s32.totalorder %s2370_s11, %s1486_s13  ;;  %s1569_s26 = smov [#allocation8]  }
 0x14c   : > { %s1490_s9 = sshll.u32 %s1569_s26, 4  ;;  %s1491_s9 = int_to_ptr.vmem [resolvable:$false] %s1490_s9 }
 0x14d   : > { %p1488_p5 = pnand %p1487_p4, %p2519_p0  ;;  %s1492_s5 = scalar_lea.vmem %s1491_s9, 4096 }
 0x14e   : > { %p1493_p11 = scmp.lt.s32.totalorder %s2370_s11, %s1491_s9  ;;  %p1494_p7 = scmp.lt.s32.totalorder %s1492_s5, %s1486_s13 }
 0x14f   : > { %p1489_p10 = pneg %p1488_p5 }
 0x150   : > { %p1495_p8 = por %p1494_p7, %p1493_p11 }
 0x152   : > { %p1496_p13 = pnand %p1495_p8, %p1489_p10 }
 0x154   : > { %1499 = shalt.err (!%p1496_p13)
}
 0x155   : > { %s1500_s22 = scalar_lea.hbm %s2367_s23, 2048  ;;  %s1504_s20 = scalar_lea.hbm %s2457_s3, 6144 }
 0x156   : > { %p1501_p1 = scmp.ne.s32.totalorder %s2367_s23, %s1500_s22  ;;  %p1505_p12 = scmp.lt.u32.totalorder %s2367_s23, %s2457_s3 }
 0x157   : > { %p1506_p2 = scmp.lt.u32.totalorder %s1504_s20, %s1500_s22  ;;  %p1508_p4 = scmp.lt.u32.totalorder %s1500_s22, %s2367_s23 }
 0x158   : > { %p1502_p3 = pnand %p1501_p1, %p2519_p0 }
 0x159   : > { %p1507_p9 = por %p1506_p2, %p1505_p12 }
 0x15a   : > { %p1503_p6 = pneg %p1502_p3 }
 0x15b   : > { %p1509_p5 = por %p1508_p4, %p1507_p9 }
 0x15d   : > { %p1510_p10 = pnand %p1509_p5, %p1503_p6 }
 0x15f   : > { %1513 = shalt.err (!%p1510_p10)
}
 0x160   : > { %1279 = dma.vmem_to_hbm [thread:$0]  (%p2519_p0), %s2370_s11, 2048, %s2367_s23, %s981_s29, %s1567_s25, %s1567_s25, %s1568_s12   ;;  %vm734_vm0 = vcmask 7168  }
 0x161   : > { %s1190_s30 = sshll.u32 %s1616_s19, 4 }
 0x162   : > { %p281_p11 = scmp.lt.s32.totalorder %s1190_s30, 47 }
 0x164   : > { %s2526_s30 = smov (!%p281_p11, %s1190_s30), 47 }
 0x165   : > { %s1191_s13 = sshll.u32 %s2526_s30, 3 }
 0x166   : > { %s2403_s5 = scalar_lea.vmem %s2458_s4, %s1191_s13 }
 0x1aa   : > { %v691_v60 = vpop.xlane.xlu1 %690 }
 0x1ab   : > { %736 = vst.msk [vmem:[%s2403_s5 + $0x8] sm:$0xff] %vm734_vm0, %v691_v60  ;;  %v688_v61 = vpop.xlane.xlu0 %687 }
 0x1ac   : > { %735 = vst.msk [vmem:[%s2403_s5] sm:$0xff] %vm734_vm0, %v688_v61 }
 0x1ae   : > { %v697_v42 = vpop.xlane.xlu1 %696 }
 0x1af   : > { %738 = vst.msk [vmem:[%s2403_s5 + $0x18] sm:$0xff] %vm734_vm0, %v697_v42  ;;  %v694_v54 = vpop.xlane.xlu0 %693 }
 0x1b0   : > { %737 = vst.msk [vmem:[%s2403_s5 + $0x10] sm:$0xff] %vm734_vm0, %v694_v54 }
 0x1b2   : > { %v703_v36 = vpop.xlane.xlu1 %702 }
 0x1b3   : > { %740 = vst.msk [vmem:[%s2403_s5 + $0x28] sm:$0xff] %vm734_vm0, %v703_v36  ;;  %v700_v2 = vpop.xlane.xlu0 %699 }
 0x1b4   : > { %739 = vst.msk [vmem:[%s2403_s5 + $0x20] sm:$0xff] %vm734_vm0, %v700_v2 }
 0x1b6   : > { %v709_v27 = vpop.xlane.xlu1 %708 }
 0x1b7   : > { %742 = vst.msk [vmem:[%s2403_s5 + $0x38] sm:$0xff] %vm734_vm0, %v709_v27  ;;  %v706_v58 = vpop.xlane.xlu0 %705 }
 0x1b8   : > { %741 = vst.msk [vmem:[%s2403_s5 + $0x30] sm:$0xff] %vm734_vm0, %v706_v58 }
 0x1ba   : > { %v715_v34 = vpop.xlane.xlu1 %714 }
 0x1bb   : > { %744 = vst.msk [vmem:[%s2403_s5 + $0x48] sm:$0xff] %vm734_vm0, %v715_v34  ;;  %v712_v52 = vpop.xlane.xlu0 %711 }
 0x1bc   : > { %743 = vst.msk [vmem:[%s2403_s5 + $0x40] sm:$0xff] %vm734_vm0, %v712_v52 }
 0x1be   : > { %v721_v59 = vpop.xlane.xlu1 %720 }
 0x1bf   : > { %746 = vst.msk [vmem:[%s2403_s5 + $0x58] sm:$0xff] %vm734_vm0, %v721_v59  ;;  %v718_v35 = vpop.xlane.xlu0 %717 }
 0x1c0   : > { %745 = vst.msk [vmem:[%s2403_s5 + $0x50] sm:$0xff] %vm734_vm0, %v718_v35 }
 0x1c2   : > { %v727_v62 = vpop.xlane.xlu1 %726 }
 0x1c3   : > { %748 = vst.msk [vmem:[%s2403_s5 + $0x68] sm:$0xff] %vm734_vm0, %v727_v62  ;;  %v724_v14 = vpop.xlane.xlu0 %723 }
 0x1c4   : > { %747 = vst.msk [vmem:[%s2403_s5 + $0x60] sm:$0xff] %vm734_vm0, %v724_v14 }
 0x1c6   : > { %v733_v63 = vpop.xlane.xlu1 %732 }
 0x1c7   : > { %750 = vst.msk [vmem:[%s2403_s5 + $0x78] sm:$0xff] %vm734_vm0, %v733_v63  ;;  %v730_v32 = vpop.xlane.xlu0 %729 }
 0x1c8   : > { %749 = vst.msk [vmem:[%s2403_s5 + $0x70] sm:$0xff] %vm734_vm0, %v730_v32 }
 0x1c9 PF: > { %p1297_p0 = scmp.ge.s32.totalorder %s1560_s18, 2  ;;  %s1036_s19 = sand.u32 1, %s1548_s15  }
 0x1ca   : > { %p2520_p7 = scmp.ne.s32.totalorder %s2481_s28, 0  ;;  %s1037_s27 = scalar_lea.sflag [#allocation4], %s1036_s19 }
 0x1cc   : > { %p1290_p8 = pnand %p1297_p0, %p2520_p7 }
 0x1ce   : > { %1539 = dma.done.wait (!%p1290_p8), %s1037_s27, 2048  }
 0x1cf   : > { %1541 = vsyncadd (!%p1290_p8), %s1037_s27, 4294965248  ;;  %s1046_s10 = scalar_lea.sflag [#allocation9], %s1036_s19 }
 0x1d0   : > { %1543 = dma.done.wait (!%p1290_p8), %s1046_s10, 2048  }
 0x1d1   : > { %1545 = vsyncadd (!%p1290_p8), %s1046_s10, 4294965248  ;;  %p24_p13 = scmp.ge.s32.totalorder %s1620_s21, 5   ;;  %s2521_s15 = smov %s1552_s16 }
 0x1d2   : > { %s2522_s16 = smov %s1556_s17  ;;  %s2523_s17 = smov %s1632_s24 }
 0x1d3   : > { %s2524_s18 = smov %s1620_s21  ;;  %26 = sbr.rel (!%p24_p13) target bundleno = 9 (0x9), region = 115 }
 0x1da   :  { %1059 = vsyncpa [#allocation3], 1 }
 0x1db   :  { %1061 = vsyncpa [#allocation3 + $0x1], 1 }
 0x1dc   :  { %1062 = vsyncpa [#allocation6], 1 }
 0x1dd   :  { %1064 = vsyncpa [#allocation6 + $0x1], 1 }
 0x1de   :  { %1065 = vsyncpa [#allocation4], 1 }
 0x1df   :  { %1067 = vsyncpa [#allocation4 + $0x1], 1 }
 0x1e0   :  { %1068 = vsyncpa [#allocation9], 1 }
 0x1e1   :  { %1070 = vsyncpa [#allocation9 + $0x1], 1 }

</bundles_post_ra>
